<compile_context>
chip_gen: v7x
topology: tpu7x:2x2x1
jax: 0.10.0
libtpu: 0.0.40
codegen_flags: <defaults>
</compile_context>

<pallas_src>
import jax
import jax.numpy as jnp
import numpy as np
from jax.experimental import pallas as pl
from jax.experimental.pallas import tpu as pltpu


# ----------------------------- kernel ----------------------------------------


def _noise_injection_kernel(w_ref, img_ref, noise_ref, out_ref):
    # w_ref: (1, 1) f32 scalar in SMEM; img/noise/out: (TB, LANE) tiles in VMEM.
    w = w_ref[0, 0]
    out_ref[...] = (
        img_ref[...].astype(jnp.float32) + w * noise_ref[...].astype(jnp.float32)
    ).astype(out_ref.dtype)


# ----------------------------- layout planning -------------------------------


def _choose_slab(shape, total):
    """Pick a 2-D view (rows, lane) of the tensor with NO padding.

    Prefer a lane-dense reshape (lane a multiple of 128 -> unmasked vst).  If
    the element count doesn't divide, keep the original trailing dim full and
    let Pallas mask the ragged lane tail (still zero wrapper-side HBM passes).
    """
    for lane in (1024, 512, 256, 128):
        if total % lane == 0:
            return total // lane, lane
    if len(shape) >= 2:
        return int(np.prod(shape[:-1])), int(shape[-1])
    return 1, total


def _choose_row_block(rows, lane, bytes_per_row_set, sub):
    """Row-block size: big tiles for HBM efficiency, >=4 grid steps when the
    input allows it (pipelining + v7x megacore), v5e-safe VMEM footprint."""
    if rows <= sub:
        return rows  # block equals the full dim -> satisfies the (8,128) rule
    # Double-buffered 3-stream working set kept under ~12 MiB (v5e default
    # scoped VMEM is 16 MiB; v6e/v7x have >=32 MiB so this is also safe).
    budget = 12 << 20
    tb_cap = max(sub, (budget // (2 * bytes_per_row_set)) // sub * sub)
    # Aim for at least 4 grid steps so the BlockSpec pipeline actually overlaps
    # DMA with compute instead of collapsing to a single serialized block.
    tb_target = max(sub, ((pl.cdiv(rows, 4) + sub - 1) // sub) * sub)
    return min(tb_cap, tb_target)


# ----------------------------- wrapper ----------------------------------------


def noise_injection(image, noise=None, weight=None, *, seed=None):
    """Pallas implementation of NoiseInjection.forward.

    image:  (batch, num_neuron) (any shape works; treated elementwise)
    noise:  optional array broadcastable to image.shape (kept in native dtype);
            if None, fresh N(0,1) noise is sampled (requires `seed`)
    weight: scalar parameter (defaults to 0.0, matching nn.Parameter(zeros(1)))
    seed:   int seed for the fresh-noise draw when noise is None (supply a new
            seed per forward to match torch's fresh randn each call)
    """
    image = jnp.asarray(image)
    orig_shape = image.shape
    out_dtype = image.dtype
    total = int(image.size)

    if weight is None:
        weight = jnp.zeros((1,), dtype=jnp.float32)
    w2d = jnp.asarray(weight, dtype=jnp.float32).reshape(1, 1)

    if noise is None:
        if seed is None:
            raise ValueError(
                "noise=None requires an explicit integer `seed`; torch draws "
                "fresh randn each forward, so supply a fresh seed per call."
            )
        noise = jax.random.normal(jax.random.PRNGKey(seed), orig_shape, dtype=out_dtype)
    else:
        # Keep noise in its native dtype (promoted to f32 inside the kernel);
        # broadcast only if shapes actually differ.
        noise = jnp.asarray(noise)
        if noise.shape != orig_shape:
            noise = jnp.broadcast_to(noise, orig_shape)

    rows, lane = _choose_slab(orig_shape, total)
    img2d = jnp.reshape(image, (rows, lane))       # contiguous reshape: free
    noise2d = jnp.reshape(noise, (rows, lane))

    itemsizes = (
        image.dtype.itemsize,
        noise.dtype.itemsize,
        jnp.dtype(out_dtype).itemsize,
    )
    sub = max(8, 32 // min(itemsizes))             # 8 for f32, 16 for bf16, ...
    tb = _choose_row_block(rows, lane, lane * sum(itemsizes), sub)
    grid = (pl.cdiv(rows, tb),)

    block = pl.BlockSpec((tb, lane), lambda i: (i, 0))
    out2d = pl.pallas_call(
        _noise_injection_kernel,
        out_shape=jax.ShapeDtypeStruct((rows, lane), out_dtype),
        grid=grid,
        in_specs=[
            pl.BlockSpec(memory_space=pltpu.SMEM),   # scalar weight
            block,                                   # image tile
            block,                                   # noise tile
        ],
        out_specs=block,
        compiler_params=pltpu.CompilerParams(dimension_semantics=("parallel",)),
        cost_estimate=pl.CostEstimate(
            flops=2 * total,
            transcendentals=0,
            bytes_accessed=total * sum(itemsizes),
        ),
    )(w2d, img2d, noise2d)

    return out2d.reshape(orig_shape)


# ------------------------------- demo ----------------------------------------

if __name__ == "__main__":
    key = jax.random.PRNGKey(0)
    k_img, k_noise, k_img2, k_noise2 = jax.random.split(key, 4)

    # Small shape matching the module's (batch, num_neuron) interface.
    batch, num_neuron = 2, 32
    image = jax.random.normal(k_img, (batch, num_neuron), dtype=jnp.float32)
    noise = jax.random.normal(k_noise, (batch, num_neuron), dtype=jnp.float32)

    weight_zero = jnp.zeros((1,), dtype=jnp.float32)   # nn.Parameter(torch.zeros(1))
    weight_nz = jnp.array([0.37], dtype=jnp.float32)

    out_zero = jax.block_until_ready(noise_injection(image, noise, weight_zero))
    assert jnp.allclose(out_zero, image, atol=1e-6), "mismatch (zero weight)"
    out_nz = jax.block_until_ready(noise_injection(image, noise, weight_nz))
    assert jnp.allclose(out_nz, image + 0.37 * noise, atol=1e-6), "mismatch (nonzero weight)"

    # Mid-size, non-lane-aligned shape: exercises the lane-dense slab view,
    # a multi-step grid and a ragged final block -- with no wrapper pad/slice.
    b2, n2 = 512, 513
    image2 = jax.random.normal(k_img2, (b2, n2), dtype=jnp.float32)
    noise2 = jax.random.normal(k_noise2, (b2, n2), dtype=jnp.float32)
    out2 = jax.block_until_ready(noise_injection(image2, noise2, weight_nz))
    assert jnp.allclose(out2, image2 + 0.37 * noise2, atol=1e-6), "mismatch (tiled path)"

    # noise=None path: fresh N(0,1) noise (image.new_empty(...).normal_()).
    out_s0 = jax.block_until_ready(noise_injection(image, None, weight_zero, seed=1234))
    assert jnp.allclose(out_s0, image, atol=1e-6), "zero weight should be identity"
    out_s = jax.block_until_ready(noise_injection(image, None, weight_nz, seed=1234))
    assert out_s.shape == image.shape
    assert bool(jnp.all(jnp.isfinite(out_s)))
    assert not bool(jnp.allclose(out_s, image)), "noise was not injected"

    print("KERNEL_OK")
</pallas_src>

<mosaic_0001>
module attributes {stable_mosaic.version = 11 : i64} {
  func.func @_noise_injection_kernel(%arg0: i32, %arg1: memref<1x1xf32, #tpu.memory_space<smem>>, %arg2: memref<2x32xf32, #tpu.memory_space<vmem>>, %arg3: memref<2x32xf32, #tpu.memory_space<vmem>>, %arg4: memref<2x32xf32, #tpu.memory_space<vmem>>) attributes {dimension_semantics = [#tpu.dimension_semantics<parallel>], iteration_bounds = array<i64: 1>, scalar_prefetch = 0 : i64, scratch_operands = 0 : i64, tpu.core_type = #tpu.core_type<tc>, window_params = [{transform_indices = @transform_0, window_bounds = array<i64: 1, 1>}, {transform_indices = @transform_1, window_bounds = array<i64: 2, 32>}, {transform_indices = @transform_2, window_bounds = array<i64: 2, 32>}, {transform_indices = @transform_3, window_bounds = array<i64: 2, 32>}]} {
    %c0 = arith.constant 0 : index
    %c0_0 = arith.constant 0 : index
    %0 = memref.load %arg1[%c0, %c0_0] : memref<1x1xf32, #tpu.memory_space<smem>>
    %c0_1 = arith.constant 0 : index
    %c0_2 = arith.constant 0 : index
    %1 = vector.load %arg2[%c0_1, %c0_2] : memref<2x32xf32, #tpu.memory_space<vmem>>, vector<2x32xf32>
    %c0_3 = arith.constant 0 : index
    %c0_4 = arith.constant 0 : index
    %2 = vector.load %arg3[%c0_3, %c0_4] : memref<2x32xf32, #tpu.memory_space<vmem>>, vector<2x32xf32>
    %3 = vector.broadcast %0 : f32 to vector<2x32xf32>
    %4 = arith.mulf %3, %2 : vector<2x32xf32>
    %5 = arith.addf %1, %4 : vector<2x32xf32>
    %c0_5 = arith.constant 0 : index
    %c0_6 = arith.constant 0 : index
    %6 = vector.load %arg4[%c0_5, %c0_6] : memref<2x32xf32, #tpu.memory_space<vmem>>, vector<2x32xf32>
    tpu.vector_store %arg4[%c0_5, %c0_6], %5 {strides = array<i32>} : memref<2x32xf32, #tpu.memory_space<vmem>>, vector<2x32xf32>,
    return
  }
  func.func @transform_0(%arg0: i32) -> (i32, i32) {
    %c0_i32 = arith.constant 0 : i32
    %c0_i32_0 = arith.constant 0 : i32
    %c0_i32_1 = arith.constant 0 : i32
    return %c0_i32, %c0_i32_0 : i32, i32
  }
  func.func @transform_1(%arg0: i32) -> (i32, i32) {
    %c0_i32 = arith.constant 0 : i32
    %c0_i32_0 = arith.constant 0 : i32
    return %arg0, %c0_i32 : i32, i32
  }
  func.func @transform_2(%arg0: i32) -> (i32, i32) {
    %c0_i32 = arith.constant 0 : i32
    %c0_i32_0 = arith.constant 0 : i32
    return %arg0, %c0_i32 : i32, i32
  }
  func.func @transform_3(%arg0: i32) -> (i32, i32) {
    %c0_i32 = arith.constant 0 : i32
    %c0_i32_0 = arith.constant 0 : i32
    return %arg0, %c0_i32 : i32, i32
  }
}

</mosaic_0001>

<bundles_post_ra>
// kernel: tpu_custom_call.1
= control target key start
LH: loop header
LB: loop body
LE: loop exit
PB: predicated region body
PF: predicated region fallthrough
CT: control target
= control target key end

     0   :  { %s105_s0 = inlined_call_operand.<no memory space> [shape: f32[1,1], index: 0, kind: input, shape index: {}]   ;;  %s106_s1 = inlined_call_operand.vmem [shape: f32[2,32], index: 1, kind: input, shape index: {}]   ;;  %s107_s2 = inlined_call_operand.vmem [shape: f32[2,32], index: 2, kind: input, shape index: {}]   ;;  %s108_s3 = inlined_call_operand.hbm [shape: f32[2,32], index: 3, kind: output, shape index: {}]  }
   0x1   :  { %v17_v0 = vld [vmem:[%s106_s1] sm:$0x3]  ;;  %v19_v2 = vstv %s105_s0 }
   0x2   :  { %v18_v1 = vld [vmem:[%s107_s2] sm:$0x3] }
   0x3   :  { %v20_v3 = vmul.f32 %v19_v2, %v18_v1 }
   0x4   :  { %9 = vsyncpa [#allocation4], 0  ;;  %s63_s18 = smov [#allocation3]   ;;  %vm22_vm0 = vcmask 254976  }
   0x5   :  { %s30_s19 = sshll.u32 %s63_s18, 4  ;;  %v21_v4 = vadd.f32 %v20_v3, %v17_v0  ;;  %s31_s19 = int_to_ptr.vmem [resolvable:$true] %s30_s19 }
   0x6   :  { %s39_s20 = scalar_lea.vmem %s31_s19, 32  ;;  %p44_p1 = scmp.lt.s32.totalorder %s31_s19, %s31_s19 }
   0x7   :  { %23 = vst.msk [vmem:[#allocation3] sm:$0x3] %vm22_vm0, %v21_v4  ;;  %p40_p0 = scmp.ne.s32.totalorder %s31_s19, %s39_s20  ;;  %p45_p2 = scmp.lt.s32.totalorder %s39_s20, %s39_s20 }
   0x9   :  { %p46_p3 = por %p45_p2, %p44_p1 }
   0xb   :  { %p47_p4 = pnand %p46_p3, %p40_p0 }
   0xd   :  { %50 = shalt.err (!%p47_p4)
}
   0xe   :  { %s51_s21 = scalar_lea.hbm %s108_s3, 32 }
   0xf   :  { %p52_p5 = scmp.ne.s32.totalorder %s108_s3, %s51_s21  ;;  %p55_p6 = scmp.lt.u32.totalorder %s51_s21, %s108_s3 }
  0x11   :  { %p57_p7 = pnand %p55_p6, %p52_p5 }
  0x13   :  { %60 = shalt.err (!%p57_p7)
}
  0x14   :  { %33 = dma.vmem_to_hbm [thread:$0]  %s31_s19, 32, %s108_s3, [#allocation4]  }
  0x15   :  { %61 = dma.done.wait [#allocation4], 32  }
  0x16   :  { %62 = vsyncadd [#allocation4], 4294967264 }
  0x17   :  { %37 = vsyncpa [#allocation4], 1 }

</bundles_post_ra>
